<compile_context>
chip_gen: v6e
topology: v6e:2x2x1
jax: 0.10.0
libtpu: 0.0.40
codegen_flags: <defaults>
</compile_context>

<pallas_src>
import functools
import math

import numpy as np
import jax
import jax.numpy as jnp
from jax import lax
from jax.experimental import pallas as pl
from jax.experimental.pallas import tpu as pltpu

_MXU_DTYPE = jnp.bfloat16        # MXU operand dtype (accumulation stays f32)
_KDOT_MIN_CIN = 256              # per perf review: wide layers use K accumulated dots


# ----------------------------------------------------------------------------
# shared in-kernel helper: write a zero-padded, time-shifted copy of x into a
# row block of a VMEM scratch (used to build im2col / polyphase operands).
# ----------------------------------------------------------------------------
def _store_shifted(dst_ref, row0, rows, x_ref, o, t_in, t_dst):
    """dst[row0:row0+rows, j] <- x[0, :, j + o] if 0 <= j + o < t_in else 0."""
    dt = dst_ref.dtype
    rs = slice(row0, row0 + rows)
    dst_lo = max(0, -o)
    dst_hi = min(t_dst, t_in - o)                 # exclusive
    width = dst_hi - dst_lo
    if width <= 0:
        dst_ref[rs, :] = jnp.zeros((rows, t_dst), dt)
        return
    if dst_lo > 0:
        dst_ref[rs, 0:dst_lo] = jnp.zeros((rows, dst_lo), dt)
    src_lo = dst_lo + o
    dst_ref[rs, dst_lo:dst_lo + width] = x_ref[0, :, src_lo:src_lo + width].astype(dt)
    if dst_lo + width < t_dst:
        dst_ref[rs, dst_lo + width:t_dst] = jnp.zeros(
            (rows, t_dst - dst_lo - width), dt)


# ----------------------------------------------------------------------------
# Conv1d (PyTorch semantics), fused residual adds / output scale / tanh epilogue.
# Two kernel bodies:
#   * im2col : single (Cout, K*Cin) x (K*Cin, Tout) matmul  (small-channel layers)
#   * kdots  : K accumulated (Cout, Cin) x (Cin, Tout) matmuls over ONE padded copy
#              of x (wide layers: avoids writing x K times into VMEM)
# ----------------------------------------------------------------------------
def _conv1d_pallas(x, w2, bias2, residuals, *, K, dilation, padding,
                   use_kdots, out_scale, activation):
    B, Cin, T = x.shape
    Cout, KC = w2.shape
    assert KC == K * Cin
    Tout = T + 2 * padding - dilation * (K - 1)
    n_res = len(residuals)
    # bf16 scratch unless it would force stores at non-16-aligned packed row offsets.
    stk_dtype = _MXU_DTYPE if (use_kdots or Cin % 16 == 0) else jnp.float32

    def kernel(*refs):
        x_ref, w_ref, b_ref = refs[0], refs[1], refs[2]
        r_refs = refs[3:3 + n_res]
        o_ref = refs[3 + n_res]
        stk = refs[4 + n_res]
        if use_kdots:
            # one zero-padded copy of x; K accumulated dots (contraction depth Cin)
            _store_shifted(stk, 0, Cin, x_ref, -padding, T, T + 2 * padding)
            acc = jnp.dot(w_ref[:, 0:Cin], stk[:, 0:Tout],
                          preferred_element_type=jnp.float32)
            for k in range(1, K):
                acc = acc + jnp.dot(
                    w_ref[:, k * Cin:(k + 1) * Cin],
                    stk[:, k * dilation:k * dilation + Tout],
                    preferred_element_type=jnp.float32)
        else:
            # im2col: stack the K shifted taps (zero padding done in-kernel)
            for k in range(K):
                _store_shifted(stk, k * Cin, Cin, x_ref,
                               k * dilation - padding, T, Tout)
            op = stk[...]
            if op.dtype != _MXU_DTYPE:
                op = op.astype(_MXU_DTYPE)
            acc = jnp.dot(w_ref[...], op, preferred_element_type=jnp.float32)
        acc = acc + b_ref[...]
        for r_ref in r_refs:                       # fused residual adds
            acc = acc + r_ref[0].astype(jnp.float32)
        if out_scale is not None:                  # fused 1/num_kernels scale
            acc = acc * out_scale
        if activation == "tanh":
            acc = jnp.tanh(acc)
        o_ref[0] = acc.astype(o_ref.dtype)

    in_specs = [
        pl.BlockSpec((1, Cin, T), lambda b: (b, 0, 0)),
        pl.BlockSpec((Cout, KC), lambda b: (0, 0)),
        pl.BlockSpec((Cout, 1), lambda b: (0, 0)),
    ]
    inputs = [x, w2, bias2]
    for r in residuals:
        in_specs.append(pl.BlockSpec((1, Cout, Tout), lambda b: (b, 0, 0)))
        inputs.append(r)

    scr_shape = (Cin, T + 2 * padding) if use_kdots else (K * Cin, Tout)
    return pl.pallas_call(
        kernel,
        out_shape=jax.ShapeDtypeStruct((B, Cout, Tout), x.dtype),
        grid=(B,),
        in_specs=in_specs,
        out_specs=pl.BlockSpec((1, Cout, Tout), lambda b: (b, 0, 0)),
        scratch_shapes=[pltpu.VMEM(scr_shape, stk_dtype)],
        compiler_params=pltpu.CompilerParams(dimension_semantics=("parallel",)),
    )(*inputs)


def conv1d(x, pw, *, K, dilation=1, padding=0, residuals=(), out_scale=None,
           activation=None, force_path=None):
    """PyTorch-semantics Conv1d on pre-packed weights pw={'w2': (Cout,K*Cin) bf16,
    'b': (Cout,1) f32}; residuals/out_scale/tanh are fused into the epilogue."""
    w2, bias2 = pw["w2"], pw["b"]
    Cout, KC = w2.shape
    Cin = KC // K
    if force_path is not None:
        use_kdots = (force_path == "kdots")
    else:
        use_kdots = Cin >= _KDOT_MIN_CIN
    return _conv1d_pallas(x, w2, bias2, tuple(residuals), K=K, dilation=dilation,
                          padding=padding, use_kdots=use_kdots,
                          out_scale=out_scale, activation=activation)


# ----------------------------------------------------------------------------
# ConvTranspose1d: polyphase (no zero-stuffing, one matmul per output phase).
# ----------------------------------------------------------------------------
def _pack_conv_transpose(w_iok, b, *, stride, padding):
    """Pre-pack a PyTorch (Cin, Cout, K) ConvTranspose1d weight into per-phase
    (Cout, L*Cin) bf16 matrices (done once, outside the per-call path)."""
    Cin, Cout, K = w_iok.shape
    s = stride
    L = -(-K // s)                                   # taps per phase
    wt = jnp.transpose(w_iok, (1, 0, 2))             # (Cout, Cin, K)
    wt = jnp.pad(wt, ((0, 0), (0, 0), (0, s * L - K)))
    wph = wt.reshape(Cout, Cin, L, s)                 # [co,ci,l,r] = W[ci,co,s*l+r]
    phases = []
    for d in range(s):
        r = (d + padding) % s
        phases.append(jnp.transpose(wph[:, :, :, r], (0, 2, 1)).reshape(Cout, L * Cin))
    wstack = jnp.stack(phases, axis=0).astype(_MXU_DTYPE)   # (s, Cout, L*Cin)
    return {"wstack": wstack, "b": b.reshape(Cout, 1).astype(jnp.float32)}


def conv_transpose1d(x, pw, *, stride, padding, K):
    wstack, bias2 = pw["wstack"], pw["b"]
    B, Cin, T = x.shape
    s, Cout, LC = wstack.shape
    L = LC // Cin
    p = padding
    Tout = (T - 1) * s - 2 * p + K
    assert Tout % s == 0, "polyphase ConvTranspose1d expects stride | Tout"
    Tj = Tout // s
    qoffs = [(d + p) // s for d in range(s)]
    o_max = max(qoffs)
    o_min = min(qoffs) - (L - 1)
    n_o = o_max - o_min + 1
    stk_dtype = _MXU_DTYPE if Cin % 16 == 0 else jnp.float32

    def kernel(x_ref, w_ref, b_ref, o_ref, stk):
        # shifted copies of x for every distinct offset o (descending)
        for ob in range(n_o):
            _store_shifted(stk, ob * Cin, Cin, x_ref, o_max - ob, T, Tj)
        for d in range(s):
            r0 = (o_max - qoffs[d]) * Cin
            op = stk[r0:r0 + LC, :]
            if op.dtype != _MXU_DTYPE:
                op = op.astype(_MXU_DTYPE)
            acc = jnp.dot(w_ref[d], op, preferred_element_type=jnp.float32)
            o_ref[0, d] = (acc + b_ref[...]).astype(o_ref.dtype)

    out4 = pl.pallas_call(
        kernel,
        out_shape=jax.ShapeDtypeStruct((B, s, Cout, Tj), x.dtype),
        grid=(B,),
        in_specs=[
            pl.BlockSpec((1, Cin, T), lambda b: (b, 0, 0)),
            pl.BlockSpec((s, Cout, LC), lambda b: (0, 0, 0)),
            pl.BlockSpec((Cout, 1), lambda b: (0, 0)),
        ],
        out_specs=pl.BlockSpec((1, s, Cout, Tj), lambda b: (b, 0, 0, 0)),
        scratch_shapes=[pltpu.VMEM((n_o * Cin, Tj), stk_dtype)],
        compiler_params=pltpu.CompilerParams(dimension_semantics=("parallel",)),
    )(x, wstack, bias2)
    # TODO(synk): fold this interleave into the kernel epilogue (lane-interleave store)
    # so the largest activation does not round-trip HBM through an XLA transpose.
    return jnp.transpose(out4, (0, 2, 3, 1)).reshape(B, Cout, Tout)


# ----------------------------------------------------------------------------
# Fused Activation1d(SnakeBeta): polyphase 2x upsample -> SnakeBeta -> polyphase
# 2x downsample, all inside one kernel (replicate padding handled in-kernel).
# ----------------------------------------------------------------------------
def _kaiser_sinc_filter1d(cutoff, half_width, kernel_size):
    even = kernel_size % 2 == 0
    half_size = kernel_size // 2
    delta_f = 4.0 * half_width
    A = 2.285 * (half_size - 1) * math.pi * delta_f + 7.95
    if A > 50.0:
        beta = 0.1102 * (A - 8.7)
    elif A >= 21.0:
        beta = 0.5842 * (A - 21.0) ** 0.4 + 0.07886 * (A - 21.0)
    else:
        beta = 0.0
    window = np.kaiser(kernel_size, beta)
    if even:
        t = np.arange(-half_size, half_size) + 0.5
    else:
        t = np.arange(kernel_size) - half_size
    filt = 2.0 * cutoff * window * np.sinc(2.0 * cutoff * t)
    filt = filt / np.sum(filt)
    return filt.astype(np.float32)


_AA_RATIO = 2
_AA_K = int(6 * _AA_RATIO // 2) * 2                         # 12
_AA_FILTER = _kaiser_sinc_filter1d(0.5 / _AA_RATIO, 0.6 / _AA_RATIO, _AA_K)
# polyphase tap tables (static Python floats baked into the kernel)
_UP_EVEN = [float(2.0 * _AA_FILTER[11 - 2 * s]) for s in range(6)]   # output phase 2t
_UP_ODD = [float(2.0 * _AA_FILTER[10 - 2 * s]) for s in range(6)]    # output phase 2t+1
_DN_EVEN = [float(_AA_FILTER[2 * a]) for a in range(6)]
_DN_ODD = [float(_AA_FILTER[2 * a + 1]) for a in range(6)]


def _act_core(x_ref, a_ref, b_ref, buf_a, buf_b, C, T):
    """UpSample1d(2) -> SnakeBeta(alpha_logscale) -> DownSample1d(2); returns z (C,T) f32.
    buf_a: (C, T+6) scratch, reused (x-padded, then odd-phase y-padded).
    buf_b: (C, T+5) scratch (even-phase y-padded)."""
    xv = x_ref[0].astype(jnp.float32)                       # (C, T)
    x0 = xv[:, 0:1]
    xN = xv[:, T - 1:T]
    # replicate pad (3 each side) of the input, in VMEM
    buf_a[:, 0:3] = jnp.broadcast_to(x0, (C, 3))
    buf_a[:, 3:3 + T] = xv
    buf_a[:, T + 3:T + 6] = jnp.broadcast_to(xN, (C, 3))
    # --- polyphase 2x upsample (kaiser-sinc anti-alias filter) ---
    ue = _UP_EVEN[0] * buf_a[:, 0:T]
    uo = _UP_ODD[0] * buf_a[:, 1:1 + T]
    for s in range(1, 6):
        ue = ue + _UP_EVEN[s] * buf_a[:, s:s + T]
        uo = uo + _UP_ODD[s] * buf_a[:, s + 1:s + 1 + T]
    # --- SnakeBeta (alpha_logscale=True) ---
    alpha = jnp.exp(a_ref[...])
    inv_beta = pl.reciprocal(jnp.exp(b_ref[...]) + 1e-9, approx=True)
    se = jnp.sin(ue * alpha)
    so = jnp.sin(uo * alpha)
    ye = ue + inv_beta * se * se                            # even samples of y
    yo = uo + inv_beta * so * so                            # odd samples of y
    # --- polyphase 2x downsample (replicate pad of the 2T signal, scratch reused) ---
    y0c = ye[:, 0:1]
    yNc = yo[:, T - 1:T]
    buf_a[:, 0:3] = jnp.broadcast_to(y0c, (C, 3))           # odd-index phase of padded y
    buf_a[:, 3:3 + T] = yo
    buf_a[:, T + 3:T + 6] = jnp.broadcast_to(yNc, (C, 3))
    buf_b[:, 0:2] = jnp.broadcast_to(y0c, (C, 2))           # even-index phase of padded y
    buf_b[:, 2:2 + T] = ye
    buf_b[:, T + 2:T + 5] = jnp.broadcast_to(yNc, (C, 3))
    z = _DN_EVEN[0] * buf_a[:, 0:T] + _DN_ODD[0] * buf_b[:, 0:T]
    for a in range(1, 6):
        z = z + _DN_EVEN[a] * buf_a[:, a:a + T] + _DN_ODD[a] * buf_b[:, a:a + T]
    return z


def activation1d_snake(x, a2, b2):
    """Activation1d(UpSample1d(2) -> SnakeBeta -> DownSample1d(2)); a2/b2 are (C,1) f32."""
    B, C, T = x.shape

    def kernel(x_ref, a_ref, b_ref, o_ref, buf_a, buf_b):
        o_ref[0] = _act_core(x_ref, a_ref, b_ref, buf_a, buf_b, C, T).astype(o_ref.dtype)

    return pl.pallas_call(
        kernel,
        out_shape=jax.ShapeDtypeStruct((B, C, T), x.dtype),
        grid=(B,),
        in_specs=[
            pl.BlockSpec((1, C, T), lambda b: (b, 0, 0)),
            pl.BlockSpec((C, 1), lambda b: (0, 0)),
            pl.BlockSpec((C, 1), lambda b: (0, 0)),
        ],
        out_specs=pl.BlockSpec((1, C, T), lambda b: (b, 0, 0)),
        scratch_shapes=[pltpu.VMEM((C, T + 6), jnp.float32),
                        pltpu.VMEM((C, T + 5), jnp.float32)],
        compiler_params=pltpu.CompilerParams(dimension_semantics=("parallel",)),
    )(x, a2, b2)


def activation1d_snake_convpost(x, a2, b2, wpost, bpost):
    """act_post Activation1d fused with conv_post (Cout=1, K=7, pad 3) and tanh.
    The 1-row conv is a VPU broadcast-multiply + sublane reduction (no MXU matmul)."""
    B, C, T = x.shape
    Kp = wpost.shape[1]
    pad = (Kp - 1) // 2
    assert 2 * pad <= 6                                      # fits the (C, T+6) scratch

    def kernel(x_ref, a_ref, b_ref, w_ref, bias_ref, o_ref, buf_a, buf_b):
        z = _act_core(x_ref, a_ref, b_ref, buf_a, buf_b, C, T)
        # zero-pad z by `pad` each side, reusing buf_a (dead again at this point)
        buf_a[:, 0:pad] = jnp.zeros((C, pad), jnp.float32)
        buf_a[:, pad:pad + T] = z
        buf_a[:, pad + T:2 * pad + T] = jnp.zeros((C, pad), jnp.float32)
        acc = w_ref[:, 0:1] * buf_a[:, 0:T]
        for k in range(1, Kp):
            acc = acc + w_ref[:, k:k + 1] * buf_a[:, k:k + T]
        out = jnp.sum(acc, axis=0, keepdims=True) + bias_ref[...]
        o_ref[0] = jnp.tanh(out).astype(o_ref.dtype)

    return pl.pallas_call(
        kernel,
        out_shape=jax.ShapeDtypeStruct((B, 1, T), x.dtype),
        grid=(B,),
        in_specs=[
            pl.BlockSpec((1, C, T), lambda b: (b, 0, 0)),
            pl.BlockSpec((C, 1), lambda b: (0, 0)),
            pl.BlockSpec((C, 1), lambda b: (0, 0)),
            pl.BlockSpec((C, Kp), lambda b: (0, 0)),
            pl.BlockSpec((1, 1), lambda b: (0, 0)),
        ],
        out_specs=pl.BlockSpec((1, 1, T), lambda b: (b, 0, 0)),
        scratch_shapes=[pltpu.VMEM((C, T + 6), jnp.float32),
                        pltpu.VMEM((C, T + 5), jnp.float32)],
        compiler_params=pltpu.CompilerParams(dimension_semantics=("parallel",)),
    )(x, a2, b2, wpost, bpost)


# ----------------------------------------------------------------------------
# BigVGAN model (raw parameters, one-time packing, forward)
# ----------------------------------------------------------------------------
CFG = dict(
    num_mels=8,
    upsample_initial_channel=32,
    upsample_rates=(2, 2),
    upsample_kernel_sizes=(4, 4),
    resblock_kernel_sizes=(3, 7),
    resblock_dilation_sizes=((1, 3), (1, 3)),
)


def build_params(key, cfg):
    """Deterministic init in PyTorch layouts: conv weights ~ N(0, 0.01) (init_weights),
    biases 0, SnakeBeta log-alpha/beta = 0 (alpha_logscale=True); weight_norm at init
    is an identity reparametrization so it is folded."""
    def normal(k, shape):
        return 0.01 * jax.random.normal(k, shape, jnp.float32)

    keys = iter(jax.random.split(key, 512))
    C0 = cfg["upsample_initial_channel"]
    p = {
        "conv_pre_w": normal(next(keys), (C0, cfg["num_mels"], 7)),
        "conv_pre_b": jnp.zeros((C0,), jnp.float32),
        "ups": [],
        "resblocks": [],
    }
    ch = C0
    for i, (u, k) in enumerate(zip(cfg["upsample_rates"], cfg["upsample_kernel_sizes"])):
        cin = C0 // (2 ** i)
        ch = C0 // (2 ** (i + 1))
        p["ups"].append({
            "w": normal(next(keys), (cin, ch, k)),          # ConvTranspose1d (Cin, Cout, K)
            "b": jnp.zeros((ch,), jnp.float32),
        })
        for rk, rds in zip(cfg["resblock_kernel_sizes"], cfg["resblock_dilation_sizes"]):
            rb = {"c1_w": [], "c1_b": [], "c2_w": [], "c2_b": [],
                  "act_a": [], "act_b": []}
            for _d in rds:
                rb["c1_w"].append(normal(next(keys), (ch, ch, rk)))
                rb["c1_b"].append(jnp.zeros((ch,), jnp.float32))
                rb["c2_w"].append(normal(next(keys), (ch, ch, rk)))
                rb["c2_b"].append(jnp.zeros((ch,), jnp.float32))
                for _ in range(2):                           # two Activation1d per layer
                    rb["act_a"].append(jnp.zeros((ch,), jnp.float32))
                    rb["act_b"].append(jnp.zeros((ch,), jnp.float32))
            p["resblocks"].append(rb)
    p["act_post_a"] = jnp.zeros((ch,), jnp.float32)
    p["act_post_b"] = jnp.zeros((ch,), jnp.float32)
    p["conv_post_w"] = normal(next(keys), (1, ch, 7))
    p["conv_post_b"] = jnp.zeros((1,), jnp.float32)
    return p


def _pack_conv(w_oik, b):
    """(Cout, Cin, K) -> stacked (Cout, K*Cin) bf16 ; bias -> (Cout,1) f32 (done once)."""
    Cout, Cin, K = w_oik.shape
    w2 = jnp.transpose(w_oik, (0, 2, 1)).reshape(Cout, K * Cin).astype(_MXU_DTYPE)
    return {"w2": w2, "b": b.reshape(Cout, 1).astype(jnp.float32)}


def pack_params(raw, cfg):
    """One-time weight packing (hoisted out of the per-forward path)."""
    pp = {"conv_pre": _pack_conv(raw["conv_pre_w"], raw["conv_pre_b"]),
          "ups": [], "resblocks": []}
    for i, (u, k) in enumerate(zip(cfg["upsample_rates"], cfg["upsample_kernel_sizes"])):
        up = raw["ups"][i]
        pp["ups"].append(_pack_conv_transpose(up["w"], up["b"],
                                              stride=u, padding=(k - u) // 2))
    for rb in raw["resblocks"]:
        prb = {"c1": [_pack_conv(w, b) for w, b in zip(rb["c1_w"], rb["c1_b"])],
               "c2": [_pack_conv(w, b) for w, b in zip(rb["c2_w"], rb["c2_b"])],
               "act_a": [a.reshape(-1, 1).astype(jnp.float32) for a in rb["act_a"]],
               "act_b": [a.reshape(-1, 1).astype(jnp.float32) for a in rb["act_b"]]}
        pp["resblocks"].append(prb)
    ch = raw["conv_post_w"].shape[1]
    pp["act_post_a"] = raw["act_post_a"].reshape(ch, 1).astype(jnp.float32)
    pp["act_post_b"] = raw["act_post_b"].reshape(ch, 1).astype(jnp.float32)
    pp["conv_post_w"] = raw["conv_post_w"][0].astype(jnp.float32)      # (ch, 7)
    pp["conv_post_b"] = raw["conv_post_b"].reshape(1, 1).astype(jnp.float32)
    return pp


def _amp_block1(x, rb, kernel_size, dilations, *, xs_prev=None, out_scale=None):
    """AMPBlock1: (Activation1d -> dilated conv -> Activation1d -> conv) + residual.
    The in-block residual add is fused into the second conv's epilogue; on the last
    layer the running resblock sum (xs_prev) and the 1/num_kernels scale are fused too."""
    nl = len(dilations)
    for li, d in enumerate(dilations):
        xt = activation1d_snake(x, rb["act_a"][2 * li], rb["act_b"][2 * li])
        xt = conv1d(xt, rb["c1"][li], K=kernel_size, dilation=d,
                    padding=(kernel_size * d - d) // 2)
        xt = activation1d_snake(xt, rb["act_a"][2 * li + 1], rb["act_b"][2 * li + 1])
        last = (li == nl - 1)
        res = (x, xs_prev) if (last and xs_prev is not None) else (x,)
        x = conv1d(xt, rb["c2"][li], K=kernel_size, dilation=1,
                   padding=(kernel_size - 1) // 2,
                   residuals=res,
                   out_scale=out_scale if last else None)
    return x


def bigvgan_forward(pp, x, cfg=CFG):
    nk = len(cfg["resblock_kernel_sizes"])
    x = conv1d(x, pp["conv_pre"], K=7, padding=3)
    for i, (u, k) in enumerate(zip(cfg["upsample_rates"], cfg["upsample_kernel_sizes"])):
        x = conv_transpose1d(x, pp["ups"][i], stride=u, padding=(k - u) // 2, K=k)
        xs = None
        for j in range(nk):
            rb = pp["resblocks"][i * nk + j]
            xs = _amp_block1(x, rb,
                             cfg["resblock_kernel_sizes"][j],
                             cfg["resblock_dilation_sizes"][j],
                             xs_prev=xs,
                             out_scale=(1.0 / nk) if j == nk - 1 else None)
        x = xs
    # act_post + conv_post + tanh fused (no separate 1-row matmul / extra HBM pass)
    return activation1d_snake_convpost(x, pp["act_post_a"], pp["act_post_b"],
                                       pp["conv_post_w"], pp["conv_post_b"])


# ----------------------------------------------------------------------------
# Plain-JAX references (for element-wise correctness checks in __main__)
# ----------------------------------------------------------------------------
def _conv1d_ref(x, w_oik, b, *, dilation=1, padding=0, mxu_round=True):
    if mxu_round:   # mimic the kernel's bf16 MXU operands, f32 accumulation
        x = x.astype(_MXU_DTYPE).astype(jnp.float32)
        w_oik = w_oik.astype(_MXU_DTYPE).astype(jnp.float32)
    y = lax.conv_general_dilated(x, w_oik, window_strides=(1,),
                                 padding=[(padding, padding)],
                                 rhs_dilation=(dilation,),
                                 dimension_numbers=("NCH", "OIH", "NCH"))
    return y + b[None, :, None]


def _conv_transpose1d_ref(x, w_iok, b, *, stride, padding):
    Cin, Cout, K = w_iok.shape
    wc = jnp.flip(jnp.transpose(w_iok, (1, 0, 2)), axis=2)
    x = x.astype(_MXU_DTYPE).astype(jnp.float32)
    wc = wc.astype(_MXU_DTYPE).astype(jnp.float32)
    y = lax.conv_general_dilated(x, wc, window_strides=(1,),
                                 padding=[(K - 1 - padding, K - 1 - padding)],
                                 lhs_dilation=(stride,),
                                 dimension_numbers=("NCH", "OIH", "NCH"))
    return y + b[None, :, None]


def _activation1d_ref(x, log_a, log_b):
    """Direct (non-polyphase) Activation1d(SnakeBeta): replicate-pad + stride-2
    transposed kaiser-sinc conv, snake, replicate-pad + stride-2 kaiser-sinc conv."""
    f = jnp.asarray(_AA_FILTER, jnp.float32)
    B, C, T = x.shape
    xp = jnp.pad(x, ((0, 0), (0, 0), (5, 5)), mode="edge")
    Tp = T + 10
    stuffed = jnp.zeros((B, C, 2 * Tp - 1), jnp.float32).at[..., ::2].set(xp)
    spad = jnp.pad(stuffed, ((0, 0), (0, 0), (11, 11)))
    Lfull = 2 * Tp + 10
    yfull = sum(f[k] * spad[..., 11 - k:11 - k + Lfull] for k in range(12))
    y = 2.0 * yfull[..., 15:15 + 2 * T]
    alpha = jnp.exp(log_a)[None, :, None]
    beta = jnp.exp(log_b)[None, :, None]
    y = y + (1.0 / (beta + 1e-9)) * jnp.sin(y * alpha) ** 2
    ypad = jnp.pad(y, ((0, 0), (0, 0), (5, 6)), mode="edge")
    z = sum(f[k] * ypad[..., k::2][..., :T] for k in range(12))
    return z


# ----------------------------------------------------------------------------
if __name__ == "__main__":
    key = jax.random.PRNGKey(0)
    kp, kx, k1, k2, k3, k4, k5 = jax.random.split(key, 7)

    # ---------- unit checks: each Pallas kernel vs a plain-JAX reference ----------
    B, C, T = 2, 16, 32
    xu = jax.random.normal(k1, (B, C, T), jnp.float32)

    # Conv1d: im2col path vs K-accumulated-dots path vs lax reference
    wconv = 0.05 * jax.random.normal(k2, (C, C, 3), jnp.float32)
    bconv = 0.01 * jax.random.normal(k3, (C,), jnp.float32)
    pwc = _pack_conv(wconv, bconv)
    y_im2col = conv1d(xu, pwc, K=3, dilation=3, padding=3, force_path="im2col")
    y_kdots = conv1d(xu, pwc, K=3, dilation=3, padding=3, force_path="kdots")
    y_cref = _conv1d_ref(xu, wconv, bconv, dilation=3, padding=3)
    np.testing.assert_allclose(np.asarray(y_im2col), np.asarray(y_kdots),
                               atol=1e-5, rtol=1e-4)
    np.testing.assert_allclose(np.asarray(y_im2col), np.asarray(y_cref),
                               atol=1e-4, rtol=1e-3)

    # ConvTranspose1d (polyphase) vs lax reference
    wt = 0.05 * jax.random.normal(k4, (C, C // 2, 4), jnp.float32)
    bt = 0.01 * jax.random.normal(k5, (C // 2,), jnp.float32)
    pwt = _pack_conv_transpose(wt, bt, stride=2, padding=1)
    y_t = conv_transpose1d(xu, pwt, stride=2, padding=1, K=4)
    y_tref = _conv_transpose1d_ref(xu, wt, bt, stride=2, padding=1)
    np.testing.assert_allclose(np.asarray(y_t), np.asarray(y_tref),
                               atol=1e-4, rtol=1e-3)

    # fused Activation1d(SnakeBeta) vs direct reference
    la = 0.1 * jax.random.normal(k2, (C,), jnp.float32)
    lb = 0.1 * jax.random.normal(k3, (C,), jnp.float32)
    y_a = activation1d_snake(xu, la.reshape(C, 1), lb.reshape(C, 1))
    y_aref = _activation1d_ref(xu, la, lb)
    np.testing.assert_allclose(np.asarray(y_a), np.asarray(y_aref), atol=2e-2)

    # fused act_post + conv_post + tanh vs reference
    wp = 0.05 * jax.random.normal(k4, (1, C, 7), jnp.float32)
    bp = 0.01 * jax.random.normal(k5, (1,), jnp.float32)
    y_p = activation1d_snake_convpost(xu, la.reshape(C, 1), lb.reshape(C, 1),
                                      wp[0], bp.reshape(1, 1))
    y_pref = jnp.tanh(_conv1d_ref(y_aref, wp, bp, padding=3, mxu_round=False))
    np.testing.assert_allclose(np.asarray(y_p), np.asarray(y_pref), atol=2e-2)

    # ---------- full BigVGAN forward smoke test ----------
    raw = build_params(kp, CFG)
    params = pack_params(raw, CFG)                 # one-time packing, outside jit

    Bm, Tm = 2, 16
    x = jax.random.normal(kx, (Bm, CFG["num_mels"], Tm), jnp.float32)

    fwd = jax.jit(functools.partial(bigvgan_forward, cfg=CFG))
    y = jax.block_until_ready(fwd(params, x))

    total_up = int(np.prod(CFG["upsample_rates"]))
    assert y.shape == (Bm, 1, Tm * total_up), y.shape
    assert bool(jnp.all(jnp.isfinite(y)))
    assert bool(jnp.all(jnp.abs(y) <= 1.0))                  # tanh output range
    print("KERNEL_OK")
</pallas_src>

<mosaic_0001>
module attributes {stable_mosaic.version = 11 : i64} {
  func.func @kernel(%arg0: i32, %arg1: memref<1x16x32xf32, #tpu.memory_space<vmem>>, %arg2: memref<16x48xbf16, #tpu.memory_space<vmem>>, %arg3: memref<16x1xf32, #tpu.memory_space<vmem>>, %arg4: memref<1x16x32xf32, #tpu.memory_space<vmem>>, %arg5: memref<48x32xbf16, #tpu.memory_space<vmem>>) attributes {dimension_semantics = [#tpu.dimension_semantics<parallel>], iteration_bounds = array<i64: 2>, scalar_prefetch = 0 : i64, scratch_operands = 1 : i64, tpu.core_type = #tpu.core_type<tc>, window_params = [{transform_indices = @transform_0, window_bounds = array<i64: 1, 16, 32>}, {pipeline_mode = #tpu.pipeline_mode<synchronous>, transform_indices = @transform_1, window_bounds = array<i64: 16, 48>}, {pipeline_mode = #tpu.pipeline_mode<synchronous>, transform_indices = @transform_2, window_bounds = array<i64: 16, 1>}, {transform_indices = @transform_3, window_bounds = array<i64: 1, 16, 32>}]} {
    %cst = arith.constant 0.000000e+00 : bf16
    %0 = vector.broadcast %cst : bf16 to vector<16x3xbf16>
    %c0 = arith.constant 0 : index
    %c0_0 = arith.constant 0 : index
    %1 = vector.load %arg5[%c0, %c0_0] : memref<48x32xbf16, #tpu.memory_space<vmem>>, vector<16x3xbf16>
    tpu.vector_store %arg5[%c0, %c0_0], %0 {strides = array<i32>} : memref<48x32xbf16, #tpu.memory_space<vmem>>, vector<16x3xbf16>,
    %c0_1 = arith.constant 0 : index
    %c0_2 = arith.constant 0 : index
    %c0_3 = arith.constant 0 : index
    %2 = vector.load %arg1[%c0_1, %c0_2, %c0_3] : memref<1x16x32xf32, #tpu.memory_space<vmem>>, vector<1x16x29xf32>
    %3 = vector.shape_cast %2 : vector<1x16x29xf32> to vector<16x29xf32>
    %4 = arith.truncf %3 : vector<16x29xf32> to vector<16x29xbf16>
    %c0_4 = arith.constant 0 : index
    %c3 = arith.constant 3 : index
    %5 = vector.load %arg5[%c0_4, %c3] : memref<48x32xbf16, #tpu.memory_space<vmem>>, vector<16x29xbf16>
    tpu.vector_store %arg5[%c0_4, %c3], %4 {strides = array<i32>} : memref<48x32xbf16, #tpu.memory_space<vmem>>, vector<16x29xbf16>,
    %c0_5 = arith.constant 0 : index
    %c0_6 = arith.constant 0 : index
    %c0_7 = arith.constant 0 : index
    %6 = vector.load %arg1[%c0_5, %c0_6, %c0_7] : memref<1x16x32xf32, #tpu.memory_space<vmem>>, vector<1x16x32xf32>
    %7 = vector.shape_cast %6 : vector<1x16x32xf32> to vector<16x32xf32>
    %8 = arith.truncf %7 : vector<16x32xf32> to vector<16x32xbf16>
    %c16 = arith.constant 16 : index
    %c0_8 = arith.constant 0 : index
    %9 = vector.load %arg5[%c16, %c0_8] : memref<48x32xbf16, #tpu.memory_space<vmem>>, vector<16x32xbf16>
    tpu.vector_store %arg5[%c16, %c0_8], %8 {strides = array<i32>} : memref<48x32xbf16, #tpu.memory_space<vmem>>, vector<16x32xbf16>,
    %c0_9 = arith.constant 0 : index
    %c0_10 = arith.constant 0 : index
    %c3_11 = arith.constant 3 : index
    %10 = vector.load %arg1[%c0_9, %c0_10, %c3_11] : memref<1x16x32xf32, #tpu.memory_space<vmem>>, vector<1x16x29xf32>
    %11 = vector.shape_cast %10 : vector<1x16x29xf32> to vector<16x29xf32>
    %12 = arith.truncf %11 : vector<16x29xf32> to vector<16x29xbf16>
    %c32 = arith.constant 32 : index
    %c0_12 = arith.constant 0 : index
    %13 = vector.load %arg5[%c32, %c0_12] : memref<48x32xbf16, #tpu.memory_space<vmem>>, vector<16x29xbf16>
    tpu.vector_store %arg5[%c32, %c0_12], %12 {strides = array<i32>} : memref<48x32xbf16, #tpu.memory_space<vmem>>, vector<16x29xbf16>,
    %cst_13 = arith.constant 0.000000e+00 : bf16
    %14 = vector.broadcast %cst_13 : bf16 to vector<16x3xbf16>
    %c32_14 = arith.constant 32 : index
    %c29 = arith.constant 29 : index
    %15 = vector.load %arg5[%c32_14, %c29] : memref<48x32xbf16, #tpu.memory_space<vmem>>, vector<16x3xbf16>
    tpu.vector_store %arg5[%c32_14, %c29], %14 {strides = array<i32>} : memref<48x32xbf16, #tpu.memory_space<vmem>>, vector<16x3xbf16>,
    %c0_15 = arith.constant 0 : index
    %c0_16 = arith.constant 0 : index
    %16 = vector.load %arg5[%c0_15, %c0_16] : memref<48x32xbf16, #tpu.memory_space<vmem>>, vector<48x32xbf16>
    %c0_17 = arith.constant 0 : index
    %c0_18 = arith.constant 0 : index
    %17 = vector.load %arg2[%c0_17, %c0_18] : memref<16x48xbf16, #tpu.memory_space<vmem>>, vector<16x48xbf16>
    %cst_19 = arith.constant dense<0.000000e+00> : vector<16x32xf32>
    %18 = tpu.matmul %17, %16, %cst_19 {dimension_numbers = #tpu.dot_dimension_numbers<[1], [0], [0], [1], [0, 0, 1, 1], [], []>} : vector<16x48xbf16>, vector<48x32xbf16>, vector<16x32xf32> -> vector<16x32xf32>
    %c0_20 = arith.constant 0 : index
    %c0_21 = arith.constant 0 : index
    %19 = vector.load %arg3[%c0_20, %c0_21] : memref<16x1xf32, #tpu.memory_space<vmem>>, vector<16x1xf32>
    %20 = vector.broadcast %19 : vector<16x1xf32> to vector<16x32xf32>
    %21 = arith.addf %18, %20 : vector<16x32xf32>
    %c0_22 = arith.constant 0 : index
    %c0_23 = arith.constant 0 : index
    %c0_24 = arith.constant 0 : index
    %22 = vector.load %arg4[%c0_22, %c0_23, %c0_24] : memref<1x16x32xf32, #tpu.memory_space<vmem>>, vector<1x16x32xf32>
    %23 = vector.shape_cast %22 : vector<1x16x32xf32> to vector<16x32xf32>
    %24 = vector.shape_cast %21 : vector<16x32xf32> to vector<1x16x32xf32>
    tpu.vector_store %arg4[%c0_22, %c0_23, %c0_24], %24 {strides = array<i32>} : memref<1x16x32xf32, #tpu.memory_space<vmem>>, vector<1x16x32xf32>,
    return
  }
  func.func @transform_0(%arg0: i32) -> (i32, i32, i32) {
    %c0_i32 = arith.constant 0 : i32
    %c0_i32_0 = arith.constant 0 : i32
    %c0_i32_1 = arith.constant 0 : i32
    return %arg0, %c0_i32, %c0_i32_0 : i32, i32, i32
  }
  func.func @transform_1(%arg0: i32) -> (i32, i32) {
    %c0_i32 = arith.constant 0 : i32
    %c0_i32_0 = arith.constant 0 : i32
    %c0_i32_1 = arith.constant 0 : i32
    return %c0_i32, %c0_i32_0 : i32, i32
  }
  func.func @transform_2(%arg0: i32) -> (i32, i32) {
    %c0_i32 = arith.constant 0 : i32
    %c0_i32_0 = arith.constant 0 : i32
    %c0_i32_1 = arith.constant 0 : i32
    return %c0_i32, %c0_i32_0 : i32, i32
  }
  func.func @transform_3(%arg0: i32) -> (i32, i32, i32) {
    %c0_i32 = arith.constant 0 : i32
    %c0_i32_0 = arith.constant 0 : i32
    %c0_i32_1 = arith.constant 0 : i32
    return %arg0, %c0_i32, %c0_i32_0 : i32, i32, i32
  }
}

</mosaic_0001>

<bundles_post_ra>
// kernel: tpu_custom_call.1
= control target key start
LH: loop header
LB: loop body
LE: loop exit
PB: predicated region body
PF: predicated region fallthrough
CT: control target
= control target key end

     0   :  { %8 = vsyncpa [#allocation4], 0  ;;  %s821_s0 = inlined_call_operand.hbm [shape: f32[2,16,32], index: 0, kind: input, shape index: {}]   ;;  %s822_s1 = inlined_call_operand.vmem [shape: bf16[16,48], index: 1, kind: input, shape index: {}]   ;;  %s823_s2 = inlined_call_operand.vmem [shape: f32[16,1], index: 2, kind: input, shape index: {}]   ;;  %s824_s3 = inlined_call_operand.hbm [shape: f32[2,16,32], index: 3, kind: output, shape index: {}]  }
   0x1   :  { %10 = vsyncpa [#allocation4 + $0x1], 0 }
   0x2   :  { %11 = vsyncpa [#allocation5], 0 }
   0x3   :  { %13 = vsyncpa [#allocation5 + $0x1], 0  ;;  %s654_s12 = smov 0   ;;  %s656_s13 = smov 0  }
   0x4   :  { %s658_s14 = smov 0   ;;  %s660_s15 = smov 0  }
   0x5 LB: > { %s675_s16 = sadd.s32 4294967295, %s621_s15   ;;  %s421_s17 = sadd.s32 4294967294, %s621_s15   ;;  %s621_s15 = sphi %s660_s15, %s839_s15   ;;  %s617_s14 = sphi %s658_s14, %s838_s14   ;;  %s613_s13 = sphi %s656_s13, %s837_s13   ;;  %s609_s12 = sphi %s654_s12, %s836_s12  }
   0x6   : > { %s679_s18 = sadd.s32 1, %s621_s15   ;;  %s26_s19 = sadd.s32 1, %s617_s14 }
   0x7   : > { %s23_s20 = ssub.s32 %s621_s15, %s679_s18  ;;  %p33_p0 = scmp.ne.s32.totalorder %s617_s14, %s613_s13 }
   0x8   : > { %p24_p1 = scmp.eq.s32.totalorder %s23_s20, 0  ;;  %p34_p2 = scmp.eq.s32.totalorder %s621_s15, 0 }
   0x9   : > { %p39_p3 = scmp.ne.s32.totalorder %s613_s13, %s609_s12  ;;  %p40_p4 = scmp.eq.s32.totalorder %s675_s16, 0 }
   0xa   : > { %s691_s21 = scalar_select %p24_p1, %s617_s14, %s26_s19  }
   0xb   : > { %p693_p5 = por %p34_p2, %p33_p0  ;;  %p697_p6 = por %p40_p4, %p39_p3 }
   0xc   : > { %p105_p7 = scmp.eq.s32.totalorder %s675_s16, 1  ;;  %p111_p8 = scmp.eq.s32.totalorder %s421_s17, 1 }
   0xd   : > { %s828_s23 = scalar_select %p697_p6, 1, 0 }
   0xe   : > { %p480_p10 = scmp.lt.s32.totalorder %s621_s15, 2  ;;  %p704_p11 = por %p105_p7, %p33_p0 }
   0xf   : > { %p708_p12 = por %p111_p8, %p39_p3  ;;  %s137_s26 = sand.u32 1, %s617_s14  }
  0x10   : > { %s829_s24 = scalar_select %p704_p11, 1, 0 }
  0x11   : > { %s830_s25 = scalar_select %p708_p12, 1, 0 }
  0x12   : > { %s446_s27 = sshll.u32 %s621_s15, 8  ;;  %s424_s28 = sshll.u32 %s137_s26, 4 }
  0x13   : > { %s717_s4 = scalar_lea.hbm %s821_s0, %s446_s27  ;;  %s141_s5 = scalar_lea.vmem [#allocation3], %s424_s28 }
  0x14   : > { %s148_s6 = sshll.u32 %s141_s5, 4  ;;  %p721_p13 = pnand %p480_p10, %p693_p5  ;;  %s725_s6 = int_to_ptr.vmem [resolvable:$true] %s148_s6 }
  0x15   : > { %s727_s8 = scalar_lea.sflag [#allocation4], %s137_s26  ;;  %s529_s9 = scalar_lea.hbm %s717_s4, 256 }
  0x16   : > { %p530_p0 = scmp.ne.s32.totalorder %s717_s4, %s529_s9  ;;  %p531_p1 = pneg %p721_p13 }
  0x17   : > { %s534_s17 = scalar_lea.hbm %s821_s0, 512  ;;  %p535_p4 = scmp.lt.s32.totalorder %s717_s4, %s821_s0 }
  0x18   : > { %p532_p2 = pnand %p531_p1, %p530_p0  ;;  %p536_p5 = scmp.lt.s32.totalorder %s534_s17, %s529_s9 }
  0x1a   : > { %p533_p3 = pneg %p532_p2  ;;  %p537_p7 = por %p536_p5, %p535_p4 }
  0x1c   : > { %p538_p8 = pnand %p537_p7, %p533_p3 }
  0x1e   : > { %541 = shalt.err (!%p538_p8)
}
  0x1f   : > { %s542_s22 = scalar_lea.vmem %s725_s6, 256  ;;  %s623_s26 = smov [#allocation3]  }
  0x20   : > { %p543_p10 = scmp.ne.s32.totalorder %s725_s6, %s542_s22  ;;  %s547_s27 = sshll.u32 %s623_s26, 4  ;;  %s548_s27 = int_to_ptr.vmem [resolvable:$false] %s547_s27 }
  0x21   : > { %s549_s28 = scalar_lea.vmem %s548_s27, 512  ;;  %p550_p2 = scmp.lt.s32.totalorder %s725_s6, %s548_s27 }
  0x22   : > { %p545_p9 = pnand %p543_p10, %p531_p1  ;;  %p551_p12 = scmp.lt.s32.totalorder %s549_s28, %s542_s22 }
  0x24   : > { %p546_p0 = pneg %p545_p9  ;;  %p552_p11 = por %p551_p12, %p550_p2 }
  0x26   : > { %p553_p6 = pnand %p552_p11, %p546_p0 }
  0x28   : > { %556 = shalt.err (!%p553_p6)
}
  0x29   : > { %s624_s29 = smov 128   ;;  %s625_s30 = smov 8  }
  0x2a   : > { %475 = dma.hbm_to_vmem [thread:$0]  (!%p721_p13), %s717_s4, 256, %s725_s6, %s727_s8, %s624_s29, %s624_s29, %s625_s30  }
  0x2b   : > { %p427_p9 = scmp.ge.s32.totalorder %s621_s15, 1  ;;  %p156_p1 = scmp.lt.s32.totalorder %s621_s15, 3 }
  0x2d   : > { %p157_p3 = pnand %p427_p9, %p156_p1 }
  0x2e   : > { %s751_s5 = sand.u32 (!%p157_p3), 1, %s613_s13   ;;  %p832_p6 = scmp.ne.s32.totalorder (!%p157_p3), %s828_s23, 0 }
  0x2f   : > { %160 = sbr.rel (%p157_p3) target bundleno = 409 (0x199), region = 32  ;;  %s428_s9 = sshll.u32 (!%p157_p3), %s751_s5, 4 }
  0x30   : > { %s163_s10 = scalar_lea.sflag (!%p157_p3), [#allocation4], %s751_s5  ;;  %s166_s11 = scalar_lea.vmem (!%p157_p3), [#allocation3], %s428_s9 }
  0x34   : > { %600 = dma.done.wait (%p832_p6), %s163_s10, 256  }
  0x35   : > { %602 = vsyncadd (%p832_p6), %s163_s10, 4294967040  ;;  %v626_v0 = vmov 0   ;;  %vm190_vm0 = vcmask 19456   ;;  %v627_v1 = vmov 0.0   ;;  %v223_v2 = vld [vmem:[%s166_s11] sm:$0xff]  ;;  %v224_v3 = vld [vmem:[%s166_s11 + $0x8] sm:$0xff] }
  0x36   : > { %523 = vset.pattern.permute.xlu0 %v626_v0  ;;  %524 = vset.pattern.permute.xlu1 %v626_v0  ;;  %191 = vst.msk [vmem:[#allocation2] sm:$0xf] %vm190_vm0, %v626_v0  ;;  %192 = vst.msk [vmem:[#allocation2 + $0x4] sm:$0xf] %vm190_vm0, %v626_v0  ;;  %vm220_vm1 = vcmask 257024   ;;  %v451_v4 = vpack.c.bf16 %v223_v2, %v223_v2  ;;  %v452_v5 = vpack.c.bf16 %v224_v3, %v224_v3  ;;  %s628_s4 = smov 125  }
  0x37   : > { %458 = vmatprep.subr.bf16.mxu0 %v627_v1  ;;  %s629_s6 = smov 3   ;;  %vm630_vm2 = vmmov 0   ;;  %v251_v6 = vld [vmem:[%s823_s2] sm:$0xff]  ;;  %v252_v7 = vld [vmem:[%s823_s2 + $0x8] sm:$0xff]  ;;  %vm237_vm3 = vcmask 232448   ;;  %vm207_vm4 = vcmask 257048  }
  0x38   : > { %231 = vrot.lane.b32.xlu0 %v451_v4, %s628_s4  ;;  %201 = vrot.lane.b32.xlu1 %v451_v4, %s629_s6  ;;  %221 = vst.msk [vmem:[#allocation2 + $0x8] sm:$0xf] %vm220_vm1, %v451_v4  ;;  %222 = vst.msk [vmem:[#allocation2 + $0xc] sm:$0xf] %vm220_vm1, %v452_v5  ;;  %vm240_vm5 = vcmask 257256   ;;  %v528_v15 = vld [vmem:[%s822_s1] sm:$0xff]  }
  0x39   : > { %464 = vmatprep.mubr.msk.bf16.mxu0 %vm630_vm2, %v627_v1  ;;  %vm286_vm6 = vcmask 392192   ;;  %vm331_vm7 = vcmask 261120   ;;  %s188_s22 = scalar_lea.vmem [#allocation6], %s428_s9  ;;  %s453_s27 = sshll.u32 %s675_s16, 8 }
  0x3a   : > { %s348_s26 = sshll.u32 %s188_s22, 4  ;;  %s778_s30 = scalar_lea.hbm %s824_s3, %s453_s27  ;;  %s773_s26 = int_to_ptr.vmem [resolvable:$true] %s348_s26 }
  0x3b   : > { %s335_s9 = scalar_lea.sflag [#allocation5], %s751_s5  ;;  %s557_s10 = scalar_lea.vmem %s773_s26, 256 }
  0x3c   : > { %233 = vrot.lane.b32.xlu0 %v452_v5, %s628_s4  ;;  %203 = vrot.lane.b32.xlu1 %v452_v5, %s629_s6  ;;  %p558_p11 = scmp.ne.s32.totalorder %s773_s26, %s557_s10  ;;  %p833_p12 = scmp.ne.s32.totalorder %s829_s24, 0 }
  0x3d   : > { %s631_s16 = smov [#allocation6]  }
  0x3e   : > { %p559_p13 = pnand %p558_p11, %p833_p12  ;;  %s561_s11 = sshll.u32 %s631_s16, 4  ;;  %s562_s11 = int_to_ptr.vmem [resolvable:$false] %s561_s11 }
  0x3f   : > { %v526_v13 = vld [vmem:[#allocation2 + $0x8] sm:$0xff]   ;;  %s563_s4 = scalar_lea.vmem %s562_s11, 512  ;;  %p564_p5 = scmp.lt.s32.totalorder %s773_s26, %s562_s11 }
  0x40   : > { %255 = vperm.xlu0 %523, %v251_v6   ;;  %260 = vperm.xlu1 %524, %v252_v7   ;;  %p560_p4 = pneg %p559_p13  ;;  %p565_p7 = scmp.lt.s32.totalorder %s563_s4, %s557_s10 }
  0x42   : > { %p566_p8 = por %p565_p7, %p564_p5 }
  0x44   : > { %p567_p10 = pnand %p566_p8, %p560_p4 }
  0xaa   : > { %v232_v8 = vpop.permute.xlu0 %231  ;;  %v202_v9 = vpop.permute.xlu1 %201 }
  0xab   : > { %238 = vst.msk [vmem:[#allocation2 + $0x10] sm:$0xf] %vm237_vm3, %v232_v8 }
  0xac   : > { %208 = vst.msk [vmem:[#allocation2] sm:$0xf] %vm207_vm4, %v202_v9 }
  0xad   : > { %241 = vst.msk [vmem:[#allocation2 + $0x10] sm:$0xf] %vm240_vm5, %v626_v0 }
  0xae   : > { %v234_v10 = vpop.permute.xlu0 %233  ;;  %v204_v11 = vpop.permute.xlu1 %203 }
  0xaf   : > { %239 = vst.msk [vmem:[#allocation2 + $0x14] sm:$0xf] %vm237_vm3, %v234_v10 }
  0xb0   : > { %209 = vst.msk [vmem:[#allocation2 + $0x4] sm:$0xf] %vm207_vm4, %v204_v11 }
  0xb1   : > { %242 = vst.msk [vmem:[#allocation2 + $0x14] sm:$0xf] %vm240_vm5, %v626_v0 }
  0xb7   : > { %v527_v14 = vld [vmem:[#allocation2] sm:$0xff]  }
  0xb8   : > { %v525_v12 = vld [vmem:[#allocation2 + $0x10] sm:$0xff]  }
  0xb9   : > { %459 = vmatpush3.bf16.msra.mxu0 %v525_v12 }
  0xba   : > { %460 = vmatprep.subr.bf16.mxu0 %v627_v1 }
  0xbb   : > { %v256_v16 = vpop.permute.xlu0 %255  ;;  %v261_v20 = vpop.permute.xlu1 %260 }
  0xbd   : > { %461 = vmatpush3.bf16.msra.mxu0 %v526_v13 }
  0xbe   : > { %462 = vmatprep.subr.bf16.mxu0 %v627_v1 }
  0xc1   : > { %463 = vmatpush3.bf16.msra.mxu0 %v527_v14 }
  0xc4   : > { %465 = vmatmul.mubr.msk.bf16.vlgmr.msra.gmra.mxu0 %vm286_vm6, %v528_v15 }
 0x184   : > { %v324_v17 = vpop.f32.mrf.mxu0 }
 0x185   : > { %v325_v18 = vadd.f32 %v324_v17, %v256_v16 }
 0x186   : > { %v466_v19 = vpop.f32.mrf.mxu0 }
 0x187   : > { %332 = vst.msk [vmem:[%s188_s22] sm:$0xff] %vm331_vm7, %v325_v18 }
 0x188   : > { %v327_v21 = vpop.f32.mrf.mxu0 }
 0x189   : > { %v328_v22 = vadd.f32 %v327_v21, %v261_v20 }
 0x18a   : > { %v467_v23 = vpop.f32.mrf.mxu0 }
 0x18b   : > { %333 = vst.msk [vmem:[%s188_s22 + $0x8] sm:$0xff] %vm331_vm7, %v328_v22 }
 0x18c   : > { %570 = shalt.err (!%p567_p10)
}
 0x18d   : > { %s571_s6 = scalar_lea.hbm %s778_s30, 256  ;;  %s575_s8 = scalar_lea.hbm %s824_s3, 512 }
 0x18e   : > { %p572_p0 = scmp.ne.s32.totalorder %s778_s30, %s571_s6  ;;  %p576_p1 = scmp.lt.s32.totalorder %s778_s30, %s824_s3 }
 0x18f   : > { %p577_p3 = scmp.lt.s32.totalorder %s575_s8, %s571_s6 }
 0x190   : > { %p573_p2 = pnand %p572_p0, %p833_p12 }
 0x191   : > { %p578_p6 = por %p577_p3, %p576_p1 }
 0x192   : > { %p574_p9 = pneg %p573_p2 }
 0x194   : > { %p579_p11 = pnand %p578_p6, %p574_p9 }
 0x196   : > { %582 = shalt.err (!%p579_p11)
}
 0x197   : > { %s632_s20 = smov 128   ;;  %s633_s22 = smov 8  }
 0x198   : > { %470 = dma.vmem_to_hbm [thread:$0]  (%p833_p12), %s773_s26, 256, %s778_s30, %s335_s9, %s632_s20, %s632_s20, %s633_s22  }
 0x199 PF: > { %s363_s27 = sand.u32 1, %s609_s12   ;;  %p834_p13 = scmp.ne.s32.totalorder %s830_s25, 0 }
 0x19a   : > { %p835_p4 = scmp.ge.s32.totalorder %s621_s15, 2  ;;  %s364_s28 = scalar_lea.sflag [#allocation5], %s363_s27 }
 0x19c   : > { %p477_p5 = pnand %p835_p4, %p834_p13 }
 0x19e   : > { %p478_p7 = pneg %p477_p5 }
 0x1a0   : > { %604 = dma.done.wait (%p478_p7), %s364_s28, 256  }
 0x1a1   : > { %606 = vsyncadd (%p478_p7), %s364_s28, 4294967040  ;;  %p16_p8 = scmp.ge.s32.totalorder %s679_s18, 4   ;;  %s836_s12 = smov %s613_s13 }
 0x1a2   : > { %s837_s13 = smov %s617_s14  ;;  %s838_s14 = smov %s691_s21 }
 0x1a3   : > { %s839_s15 = smov %s679_s18  ;;  %18 = sbr.rel (!%p16_p8) target bundleno = 5 (0x5), region = 77 }
 0x1a8   :  { %369 = vsyncpa [#allocation4], 1 }
 0x1a9   :  { %371 = vsyncpa [#allocation4 + $0x1], 1 }
 0x1aa   :  { %372 = vsyncpa [#allocation5], 1 }
 0x1ab   :  { %374 = vsyncpa [#allocation5 + $0x1], 1 }

</bundles_post_ra>
